<compile_context>
chip_gen: v7x
topology: tpu7x:2x2x1
jax: 0.10.0
libtpu: 0.0.40
codegen_flags: <defaults>
</compile_context>

<pallas_src>
import functools
import math

import jax
import jax.numpy as jnp
from jax.experimental import pallas as pl
from jax.experimental.pallas import tpu as pltpu

_LANES = 128            # vreg lane width
_MAX_BLOCK_ROWS = 1024  # 1024 * 128 * 4 B = 512 KiB per input per pipeline buffer


def _bce_logits_kernel(x_ref, y_ref, o_ref, acc_ref, *,
                       pos_weight, n_valid, tail_valid):
    """One grid step: stable BCE-with-logits on a (block_rows, 128) tile."""
    i = pl.program_id(0)
    last = pl.num_programs(0) - 1

    @pl.when(i == 0)
    def _():
        acc_ref[...] = jnp.zeros_like(acc_ref)

    x = x_ref[...].astype(jnp.float32)
    y = y_ref[...].astype(jnp.float32)

    # PyTorch's numerically stable formulation:
    #   lw   = 1 + (pos_weight - 1) * y
    #   loss = (1 - y) * x + lw * (log1p(exp(-|x|)) + max(-x, 0))
    log_weight = 1.0 + (pos_weight - 1.0) * y
    elem = (1.0 - y) * x + log_weight * (
        jnp.log1p(jnp.exp(-jnp.abs(x))) + jnp.maximum(-x, 0.0)
    )

    br, lanes = elem.shape
    block_elems = br * lanes
    has_pad = tail_valid < block_elems  # static (trace-time) condition

    if has_pad:
        # Only the last tile can contain zero-padding; mask it there with a
        # tile-local index (no per-step mask ops, no int32 overflow risk).
        @pl.when(i != last)
        def _():
            acc_ref[...] += elem.reshape(-1, 8, lanes).sum(axis=0)

        @pl.when(i == last)
        def _():
            row = jax.lax.broadcasted_iota(jnp.int32, (br, lanes), 0)
            col = jax.lax.broadcasted_iota(jnp.int32, (br, lanes), 1)
            local_idx = row * lanes + col
            masked = jnp.where(local_idx < tail_valid, elem, 0.0)
            acc_ref[...] += masked.reshape(-1, 8, lanes).sum(axis=0)
    else:
        acc_ref[...] += elem.reshape(-1, 8, lanes).sum(axis=0)

    @pl.when(i == last)
    def _():
        # Single cross-lane/sublane reduce of the (8,128) accumulator.
        o_ref[0, 0] = jnp.sum(acc_ref[...]) / jnp.float32(n_valid)


def simple_loss(ypred, ytgt, pos_weight):
    """BCEWithLogitsLoss(pos_weight)(ypred, ytgt), mean reduction -> f32 scalar."""
    assert ypred.shape == ytgt.shape
    n_valid = int(math.prod(ypred.shape))

    # Lane-dense slab: (rows_pad, 128), rows_pad a multiple of block_rows.
    rows = pl.cdiv(n_valid, _LANES)
    block_rows = min(_MAX_BLOCK_ROWS, ((rows + 7) // 8) * 8)
    rows_pad = ((rows + block_rows - 1) // block_rows) * block_rows
    total_pad = rows_pad * _LANES
    num_tiles = rows_pad // block_rows
    tail_valid = n_valid - (num_tiles - 1) * block_rows * _LANES

    def to_slab(a):
        flat = a.reshape(-1)
        if total_pad != n_valid:  # pad only when required (keeps native dtype)
            flat = jnp.pad(flat, (0, total_pad - n_valid))
        return flat.reshape(rows_pad, _LANES)

    x2 = to_slab(ypred)
    y2 = to_slab(ytgt)

    kernel = functools.partial(
        _bce_logits_kernel,
        pos_weight=float(pos_weight),
        n_valid=n_valid,
        tail_valid=tail_valid,
    )

    out = pl.pallas_call(
        kernel,
        out_shape=jax.ShapeDtypeStruct((1, 1), jnp.float32),
        grid_spec=pltpu.PrefetchScalarGridSpec(
            num_scalar_prefetch=0,
            grid=(num_tiles,),
            in_specs=[
                pl.BlockSpec((block_rows, _LANES), lambda i: (i, 0)),
                pl.BlockSpec((block_rows, _LANES), lambda i: (i, 0)),
            ],
            out_specs=pl.BlockSpec(
                (1, 1), lambda i: (0, 0), memory_space=pltpu.SMEM
            ),
            scratch_shapes=[pltpu.VMEM((8, _LANES), jnp.float32)],
        ),
        compiler_params=pltpu.CompilerParams(
            dimension_semantics=("arbitrary",),
        ),
    )(x2, y2)
    return out[0, 0]
    # TODO(synk): optional v7x 2-TC split of the reduction (leading "parallel"
    # grid axis with per-core partial sums) omitted; single-core streaming
    # reduce is already near HBM roofline with 1024-row tiles.


def _reference_loss(ypred, ytgt, pos_weight):
    x = ypred.astype(jnp.float32)
    y = ytgt.astype(jnp.float32)
    lw = 1.0 + (pos_weight - 1.0) * y
    elem = (1.0 - y) * x + lw * (jnp.log1p(jnp.exp(-jnp.abs(x))) + jnp.maximum(-x, 0.0))
    return jnp.mean(elem)


if __name__ == "__main__":
    key = jax.random.PRNGKey(0)
    pos_weight = 2.5  # deterministic scalar parameter of SimpleLoss.__init__

    # Main test: (B, C, H, W) = (2, 4, 16, 16) — evenly tiled path (no padding).
    k1, k2, k3, k4 = jax.random.split(key, 4)
    shape = (2, 4, 16, 16)
    ypred = jax.random.normal(k1, shape, dtype=jnp.float32)
    ytgt = (jax.random.uniform(k2, shape) > 0.5).astype(jnp.float32)

    loss = jax.block_until_ready(simple_loss(ypred, ytgt, pos_weight))
    ref = _reference_loss(ypred, ytgt, pos_weight)
    assert jnp.allclose(loss, ref, rtol=1e-5, atol=1e-6), (loss, ref)

    # Ragged test: exercises the masked last-tile path.
    shape2 = (3, 5, 7, 11)
    yp2 = jax.random.normal(k3, shape2, dtype=jnp.float32)
    yt2 = (jax.random.uniform(k4, shape2) > 0.5).astype(jnp.float32)
    loss2 = jax.block_until_ready(simple_loss(yp2, yt2, pos_weight))
    ref2 = _reference_loss(yp2, yt2, pos_weight)
    assert jnp.allclose(loss2, ref2, rtol=1e-5, atol=1e-6), (loss2, ref2)

    print("KERNEL_OK")
</pallas_src>

<mosaic_0001>
module attributes {stable_mosaic.version = 11 : i64} {
  func.func @_bce_logits_kernel(%arg0: i32, %arg1: memref<16x128xf32, #tpu.memory_space<vmem>>, %arg2: memref<16x128xf32, #tpu.memory_space<vmem>>, %arg3: memref<1x1xf32, #tpu.memory_space<smem>>, %arg4: memref<8x128xf32, #tpu.memory_space<vmem>>) attributes {dimension_semantics = [#tpu.dimension_semantics<arbitrary>], iteration_bounds = array<i64: 1>, scalar_prefetch = 0 : i64, scratch_operands = 1 : i64, tpu.core_type = #tpu.core_type<tc>, window_params = [{transform_indices = @transform_0, window_bounds = array<i64: 16, 128>}, {transform_indices = @transform_1, window_bounds = array<i64: 16, 128>}, {transform_indices = @transform_2, window_bounds = array<i64: 1, 1>}]} {
    %c0_i32 = arith.constant 0 : i32
    %0 = arith.cmpi eq, %arg0, %c0_i32 : i32
    %1 = arith.extui %0 : i1 to i32
    %c0_i32_0 = arith.constant 0 : i32
    %2 = arith.cmpi ne, %1, %c0_i32_0 : i32
    scf.if %2 {
      %cst_16 = arith.constant 0.000000e+00 : f32
      %32 = vector.broadcast %cst_16 : f32 to vector<8x128xf32>
      %c0_17 = arith.constant 0 : index
      %c0_18 = arith.constant 0 : index
      %33 = vector.load %arg4[%c0_17, %c0_18] : memref<8x128xf32, #tpu.memory_space<vmem>>, vector<8x128xf32>
      tpu.vector_store %arg4[%c0_17, %c0_18], %32 {strides = array<i32>} : memref<8x128xf32, #tpu.memory_space<vmem>>, vector<8x128xf32>,
    } else {
    }
    %c0 = arith.constant 0 : index
    %c0_1 = arith.constant 0 : index
    %3 = vector.load %arg1[%c0, %c0_1] : memref<16x128xf32, #tpu.memory_space<vmem>>, vector<16x128xf32>
    %c0_2 = arith.constant 0 : index
    %c0_3 = arith.constant 0 : index
    %4 = vector.load %arg2[%c0_2, %c0_3] : memref<16x128xf32, #tpu.memory_space<vmem>>, vector<16x128xf32>
    %cst = arith.constant 1.500000e+00 : f32
    %5 = vector.broadcast %cst : f32 to vector<16x128xf32>
    %6 = arith.mulf %5, %4 : vector<16x128xf32>
    %cst_4 = arith.constant 1.000000e+00 : f32
    %7 = vector.broadcast %cst_4 : f32 to vector<16x128xf32>
    %8 = arith.addf %7, %6 : vector<16x128xf32>
    %cst_5 = arith.constant 1.000000e+00 : f32
    %9 = vector.broadcast %cst_5 : f32 to vector<16x128xf32>
    %10 = arith.subf %9, %4 : vector<16x128xf32>
    %11 = arith.mulf %10, %3 : vector<16x128xf32>
    %12 = math.absf %3 : vector<16x128xf32>
    %cst_6 = arith.constant 0.000000e+00 : f32
    %13 = vector.broadcast %cst_6 : f32 to vector<16x128xf32>
    %14 = arith.subf %13, %12 : vector<16x128xf32>
    %15 = math.exp %14 : vector<16x128xf32>
    %16 = math.log1p %15 : vector<16x128xf32>
    %cst_7 = arith.constant 0.000000e+00 : f32
    %17 = vector.broadcast %cst_7 : f32 to vector<16x128xf32>
    %18 = arith.subf %17, %3 : vector<16x128xf32>
    %cst_8 = arith.constant 0.000000e+00 : f32
    %19 = vector.broadcast %cst_8 : f32 to vector<16x128xf32>
    %20 = arith.maximumf %18, %19 : vector<16x128xf32>
    %21 = arith.addf %16, %20 : vector<16x128xf32>
    %22 = arith.mulf %8, %21 : vector<16x128xf32>
    %23 = arith.addf %11, %22 : vector<16x128xf32>
    %c0_9 = arith.constant 0 : index
    %c0_10 = arith.constant 0 : index
    %24 = vector.load %arg4[%c0_9, %c0_10] : memref<8x128xf32, #tpu.memory_space<vmem>>, vector<8x128xf32>
    %25 = vector.shape_cast %23 : vector<16x128xf32> to vector<2x8x128xf32>
    %cst_11 = arith.constant dense<0.000000e+00> : vector<8x128xf32>
    %26 = vector.multi_reduction <add>, %25, %cst_11 [0] : vector<2x8x128xf32> to vector<8x128xf32>
    %27 = arith.addf %24, %26 : vector<8x128xf32>
    %c0_12 = arith.constant 0 : index
    %c0_13 = arith.constant 0 : index
    %28 = vector.load %arg4[%c0_12, %c0_13] : memref<8x128xf32, #tpu.memory_space<vmem>>, vector<8x128xf32>
    tpu.vector_store %arg4[%c0_12, %c0_13], %27 {strides = array<i32>} : memref<8x128xf32, #tpu.memory_space<vmem>>, vector<8x128xf32>,
    %c0_i32_14 = arith.constant 0 : i32
    %29 = arith.cmpi eq, %arg0, %c0_i32_14 : i32
    %30 = arith.extui %29 : i1 to i32
    %c0_i32_15 = arith.constant 0 : i32
    %31 = arith.cmpi ne, %30, %c0_i32_15 : i32
    scf.if %31 {
      %c0_16 = arith.constant 0 : index
      %c0_17 = arith.constant 0 : index
      %32 = vector.load %arg4[%c0_16, %c0_17] : memref<8x128xf32, #tpu.memory_space<vmem>>, vector<8x128xf32>
      %33 = vector.shape_cast %32 : vector<8x128xf32> to vector<1x8x128xf32>
      %cst_18 = arith.constant dense<0.000000e+00> : vector<1xf32>
      %34 = vector.multi_reduction <add>, %33, %cst_18 [1, 2] : vector<1x8x128xf32> to vector<1xf32>
      %35 = vector.shape_cast %34 : vector<1xf32> to vector<1x1x1xf32>
      %36 = vector.extract %35[0, 0, 0] : f32 from vector<1x1x1xf32>
      %cst_19 = arith.constant 2.048000e+03 : f32
      %37 = arith.divf %36, %cst_19 : f32
      %c0_20 = arith.constant 0 : index
      %c0_21 = arith.constant 0 : index
      %38 = memref.load %arg3[%c0_20, %c0_21] : memref<1x1xf32, #tpu.memory_space<smem>>
      memref.store %37, %arg3[%c0_20, %c0_21] : memref<1x1xf32, #tpu.memory_space<smem>>
    } else {
    }
    return
  }
  func.func @transform_0(%arg0: i32) -> (i32, i32) {
    %c0_i32 = arith.constant 0 : i32
    %c0_i32_0 = arith.constant 0 : i32
    return %arg0, %c0_i32 : i32, i32
  }
  func.func @transform_1(%arg0: i32) -> (i32, i32) {
    %c0_i32 = arith.constant 0 : i32
    %c0_i32_0 = arith.constant 0 : i32
    return %arg0, %c0_i32 : i32, i32
  }
  func.func @transform_2(%arg0: i32) -> (i32, i32) {
    %c0_i32 = arith.constant 0 : i32
    %c0_i32_0 = arith.constant 0 : i32
    %c0_i32_1 = arith.constant 0 : i32
    return %c0_i32, %c0_i32_0 : i32, i32
  }
}

</mosaic_0001>

<bundles_post_ra>
// kernel: tpu_custom_call.1
= control target key start
LH: loop header
LB: loop body
LE: loop exit
PB: predicated region body
PF: predicated region fallthrough
CT: control target
= control target key end

     0   :  { %7 = vsyncpa [#allocation4], 0  ;;  %s261_s0 = inlined_call_operand.hbm [shape: f32[16,128], index: 0, kind: input, shape index: {}]   ;;  %s262_s1 = inlined_call_operand.hbm [shape: f32[16,128], index: 1, kind: input, shape index: {}]   ;;  %s263_s2 = inlined_call_operand.hbm [shape: f32[1,1], index: 2, kind: output, shape index: {}]  }
   0x1   :  { %8 = vsyncpa [#allocation7], 0 }
   0x2   :  { %9 = vsyncpa [#allocation5], 0  ;;  %s205_s9 = smov [#allocation3]   ;;  %s145_s13 = scalar_lea.hbm %s261_s0, 256 }
   0x3   :  { %s15_s10 = sshll.u32 %s205_s9, 4  ;;  %p146_p0 = scmp.ne.s32.totalorder %s261_s0, %s145_s13  ;;  %s16_s10 = int_to_ptr.vmem [resolvable:$true] %s15_s10 }
   0x4   :  { %p149_p1 = scmp.lt.u32.totalorder %s145_s13, %s261_s0 }
   0x6   :  { %p151_p2 = pnand %p149_p1, %p146_p0 }
   0x8   :  { %154 = shalt.err (!%p151_p2)
}
   0x9   :  { %s155_s18 = scalar_lea.vmem %s16_s10, 256  ;;  %p160_p4 = scmp.lt.s32.totalorder %s16_s10, %s16_s10 }
   0xa   :  { %p156_p3 = scmp.ne.s32.totalorder %s16_s10, %s155_s18  ;;  %p161_p5 = scmp.lt.s32.totalorder %s155_s18, %s155_s18 }
   0xc   :  { %p162_p6 = por %p161_p5, %p160_p4 }
   0xe   :  { %p163_p7 = pnand %p162_p6, %p156_p3 }
  0x10   :  { %166 = shalt.err (!%p163_p7)
}
  0x11   :  { %s206_s19 = smov 128   ;;  %s207_s20 = smov 8  }
  0x12   :  { %21 = dma.hbm_to_vmem [thread:$0]  %s261_s0, 256, %s16_s10, [#allocation4], %s206_s19, %s206_s19, %s207_s20  }
  0x13   :  { %s208_s23 = smov [#allocation6]   ;;  %s167_s27 = scalar_lea.hbm %s262_s1, 256 }
  0x14   :  { %s27_s24 = sshll.u32 %s208_s23, 4  ;;  %p168_p8 = scmp.ne.s32.totalorder %s262_s1, %s167_s27  ;;  %s28_s24 = int_to_ptr.vmem [resolvable:$true] %s27_s24 }
  0x15   :  { %p171_p9 = scmp.lt.u32.totalorder %s167_s27, %s262_s1 }
  0x17   :  { %p173_p10 = pnand %p171_p9, %p168_p8 }
  0x19   :  { %176 = shalt.err (!%p173_p10)
}
  0x1a   :  { %s177_s4 = scalar_lea.vmem %s28_s24, 256  ;;  %p182_p12 = scmp.lt.s32.totalorder %s28_s24, %s28_s24 }
  0x1b   :  { %p178_p11 = scmp.ne.s32.totalorder %s28_s24, %s177_s4  ;;  %p183_p13 = scmp.lt.s32.totalorder %s177_s4, %s177_s4 }
  0x1d   :  { %p184_p0 = por %p183_p13, %p182_p12 }
  0x1f   :  { %p185_p1 = pnand %p184_p0, %p178_p11 }
  0x21   :  { %188 = shalt.err (!%p185_p1)
}
  0x22   :  { %33 = dma.hbm_to_vmem [thread:$0]  %s262_s1, 256, %s28_s24, [#allocation7], %s206_s19, %s206_s19, %s207_s20  }
  0x23   :  { %199 = dma.done.wait [#allocation4], 256  }
  0x24   :  { %200 = vsyncadd [#allocation4], 4294967040 }
  0x25   :  { %201 = dma.done.wait [#allocation7], 256  }
  0x26   :  { %202 = vsyncadd [#allocation7], 4294967040  ;;  %v45_v0 = vld [vmem:[#allocation3] sm:$0xff]  ;;  %v46_v1 = vld [vmem:[#allocation3 + $0x8] sm:$0xff]  ;;  %s189_s9 = scalar_lea.hbm %s263_s2, 16 }
  0x27   :  { %v57_v2 = vand.u32 2147483647, %v45_v0  ;;  %v58_v3 = vand.u32 2147483647, %v46_v1  ;;  %v47_v14 = vld [vmem:[#allocation6] sm:$0xff]  ;;  %v48_v16 = vld [vmem:[#allocation6 + $0x8] sm:$0xff]  ;;  %p190_p2 = scmp.ne.s32.totalorder %s263_s2, %s189_s9  ;;  %p193_p3 = scmp.lt.u32.totalorder %s189_s9, %s263_s2 }
  0x28   :  { %v83_v19 = vsub.f32 0.0, %v45_v0  ;;  %v84_v21 = vsub.f32 0.0, %v46_v1  ;;  %v49_v22 = vmul.f32 1.5, %v47_v14  ;;  %v50_v23 = vmul.f32 1.5, %v48_v16 }
  0x29   :  { %v59_v4 = vsub.f32 0.0, %v57_v2  ;;  %v60_v5 = vsub.f32 0.0, %v58_v3  ;;  %v53_v26 = vsub.f32 1.0, %v47_v14  ;;  %v54_v30 = vsub.f32 1.0, %v48_v16  ;;  %p195_p4 = pnand %p193_p3, %p190_p2 }
  0x2a   :  { %v85_v28 = vmax.f32 %v83_v19, 0.0  ;;  %v86_v32 = vmax.f32 %v84_v21, 0.0  ;;  %v51_v33 = vadd.f32 1.0, %v49_v22  ;;  %v52_v35 = vadd.f32 1.0, %v50_v23 }
  0x2b   :  { %v61_v6 = vmul.f32 1.442695, %v59_v4  ;;  %v63_v7 = vmul.f32 1.442695, %v60_v5  ;;  %v55_v37 = vmul.f32 %v53_v26, %v45_v0  ;;  %v56_v40 = vmul.f32 %v54_v30, %v46_v1 }
  0x2d   :  { %137 = vpow2.f32 %v61_v6 }
  0x2e   :  { %139 = vpow2.f32 %v63_v7 }
  0x37   :  { %v138_v8 = vpop.eup %137 }
  0x38   :  { %v140_v9 = vpop.eup %139  ;;  %v65_v10 = vadd.f32 1.0, %v138_v8  ;;  %v68_v12 = vmul.f32 -0.5, %v138_v8  ;;  %v71_v17 = vand.u32 2147483647, %v138_v8 }
  0x39   :  { %v74_v11 = vadd.f32 1.0, %v140_v9  ;;  %v77_v13 = vmul.f32 -0.5, %v140_v9  ;;  %v80_v20 = vand.u32 2147483647, %v140_v9 }
  0x3a   :  { %141 = vlog2.f32 %v65_v10  ;;  %v69_v15 = vadd.f32 1.0, %v68_v12  ;;  %vm72_vm0 = vcmp.lt.f32.partialorder %v71_v17, 0.0004427343 }
  0x3b   :  { %143 = vlog2.f32 %v74_v11  ;;  %v78_v18 = vadd.f32 1.0, %v77_v13  ;;  %vm81_vm1 = vcmp.lt.f32.partialorder %v80_v20, 0.0004427343 }
  0x3c   :  { %v70_v24 = vmul.f32 %v138_v8, %v69_v15 }
  0x3d   :  { %v79_v27 = vmul.f32 %v140_v9, %v78_v18 }
  0x44   :  { %v142_v25 = vpop.eup %141 }
  0x45   :  { %v144_v29 = vpop.eup %143  ;;  %v67_v31 = vmul.f32 0.6931472, %v142_v25 }
  0x46   :  { %v76_v34 = vmul.f32 0.6931472, %v144_v29 }
  0x47   :  { %v73_v36 = vsel %vm72_vm0, %v70_v24, %v67_v31 }
  0x48   :  { %v82_v38 = vsel %vm81_vm1, %v79_v27, %v76_v34  ;;  %v87_v39 = vadd.f32 %v85_v28, %v73_v36 }
  0x49   :  { %v88_v41 = vadd.f32 %v86_v32, %v82_v38 }
  0x4a   :  { %v89_v42 = vmul.f32 %v87_v39, %v51_v33 }
  0x4b   :  { %v90_v43 = vmul.f32 %v88_v41, %v52_v35 }
  0x4c   :  { %v91_v44 = vadd.f32 %v89_v42, %v55_v37 }
  0x4d   :  { %v92_v45 = vadd.f32 %v90_v43, %v56_v40 }
  0x4f   :  { %v94_v46 = vadd.f32 %v92_v45, %v91_v44 }
  0x51   :  { %101 = vadd.xlane.f32.xlu0 %v94_v46 }
  0xde   :  { %v102_v47 = vpop.xlane.xlu0 %101 }
  0xdf   :  { %v103_v48 = vrot.slane %v102_v47, 4 }
  0xe1   :  { %v104_v49 = vadd.f32 %v103_v48, %v102_v47 }
  0xe3   :  { %v105_v50 = vrot.slane %v104_v49, 2 }
  0xe5   :  { %v106_v51 = vadd.f32 %v105_v50, %v104_v49 }
  0xe7   :  { %v107_v52 = vrot.slane %v106_v51, 1 }
  0xe9   :  { %v108_v53 = vadd.f32 %v107_v52, %v106_v51 }
  0xeb   :  { %130 = vpush %v108_v53 }
 0x11c   :  { %s131_s1 = spop %130 }
 0x11d   :  { %s112_s6 = smul.f32 0.00048828125, %s131_s1 }
 0x11f   :  { %114 = sst [smem:[#allocation8]] %s112_s6 }
 0x120   :  { %198 = shalt.err (!%p195_p4)
}
 0x121   :  { %s209_s14 = smov [#allocation8]  }
 0x122   :  { %122 = dma.smem_to_hbm %s209_s14, 16, %s263_s2, [#allocation5]  }
 0x123   :  { %203 = dma.done.wait [#allocation5], 16  }
 0x124   :  { %204 = vsyncadd [#allocation5], 4294967280 }
 0x125   :  { %126 = sfence }
 0x126   :  { %127 = vsyncpa [#allocation4], 1 }
 0x127   :  { %128 = vsyncpa [#allocation7], 1 }
 0x128   :  { %129 = vsyncpa [#allocation5], 1 }

</bundles_post_ra>
